<compile_context>
chip_gen: v7x
topology: tpu7x:2x2x1
jax: 0.10.0
libtpu: 0.0.40
codegen_flags: <defaults>
</compile_context>

<pallas_src>
import jax
import jax.numpy as jnp
from jax.experimental import pallas as pl
from jax.experimental.pallas import tpu as pltpu


def _pair(v):
    if isinstance(v, tuple):
        assert len(v) == 2, "kernel_size/stride/padding must be int or 2-tuple"
        return (int(v[0]), int(v[1]))
    return (int(v), int(v))


def _round_up(a, b):
    return (a + b - 1) // b * b


def _softpool_kernel(*refs):
    # refs = K input refs of block shape (tn, Mp), then the output ref (tn, Mp).
    *in_refs, o_ref = refs

    # Stable-softmax running max: read each ref once, keep only the running
    # max live (no list of K casted f32 tiles -> low vreg/VMEM pressure).
    m = in_refs[0][...].astype(jnp.float32)
    for r in in_refs[1:]:
        m = jnp.maximum(m, r[...].astype(jnp.float32))

    # Softmax-weighted sum; re-read the refs (VMEM re-reads are nearly free).
    denom = jnp.zeros_like(m)
    num = jnp.zeros_like(m)
    for r in in_refs:
        p = r[...].astype(jnp.float32)
        e = jnp.exp(p - m)          # EUP
        denom = denom + e
        num = num + e * p

    inv = pl.reciprocal(denom, approx=True)     # EUP slot, ~free
    inv = inv * (2.0 - denom * inv)             # one Newton step -> near-exact divide
    o_ref[...] = (num * inv).astype(o_ref.dtype)


def soft_pool2d(x, kernel_size=2, stride=None, padding=0, stream_bf16=False):
    """SoftPool2d forward. x: (B, C, H, W) -> (B, C, H_out, W_out).

    stream_bf16: if True, the K materialized window views are streamed in
    bfloat16 (halves HBM read traffic for f32 inputs; softmax math stays f32
    in-kernel). Off by default for full input-precision parity.
    """
    kh, kw = _pair(kernel_size)
    if stride is None:
        stride = kernel_size
    sh, sw = _pair(stride)
    ph, pw = _pair(padding)

    B, C, H, W = x.shape
    H_out = (H + 2 * ph - kh) // sh + 1
    W_out = (W + 2 * pw - kw) // sw + 1

    if ph or pw:
        # Zero padding participates in the window softmax (F.unfold semantics).
        # NOTE: keep the pad value 0 (finite); the padded (Np, Mp) tail also
        # relies on softmax-of-zeros being finite before it is sliced off.
        x = jnp.pad(x, ((0, 0), (0, 0), (ph, ph), (pw, pw)))

    K = kh * kw
    P = B * C * H_out * W_out            # total output elements

    out_dtype = x.dtype
    view_dtype = jnp.bfloat16 if stream_bf16 else x.dtype

    # ---- lane-dense tiling ------------------------------------------------
    # Wide lanes -> unmasked vst; keep the per-step footprint in check for
    # larger K by narrowing the lane tile.
    LANE_TILE = 1024 if K <= 4 else 512
    Mp = LANE_TILE if P >= LANE_TILE else _round_up(P, 128)
    Np_raw = -(-P // Mp)                  # ceil-div

    # Big sublane tile (up to 512 rows), but keep >= ~4 grid steps for medium
    # problems so the pipeline overlaps DMA/compute and megacore can shard.
    MIN_STEPS = 4
    if Np_raw >= MIN_STEPS * 8:
        tn = min(512, _round_up(-(-Np_raw // MIN_STEPS), 8))
    else:
        tn = min(512, _round_up(Np_raw, 8))

    # VMEM sizing: (K inputs + 1 output) double-buffered + ~4 f32 temporaries.
    view_item = jnp.dtype(view_dtype).itemsize
    out_item = jnp.dtype(out_dtype).itemsize

    def _vmem_bytes(tn_, mp_):
        per_set = (K * view_item + out_item) * tn_ * mp_
        temps = 4 * tn_ * mp_ * 4
        return 2 * per_set + temps

    VMEM_BUDGET = 40 * 1024 * 1024        # safe on v7x (64 MiB physical VMEM)
    while _vmem_bytes(tn, Mp) > VMEM_BUDGET and tn > 8:
        tn = max(8, tn // 2)

    Np = _round_up(Np_raw, tn)            # pad N up to a multiple of the tile
    grid = (Np // tn,)
    pad_elems = Np * Mp - P

    # Generation-aware-ish VMEM limit: derive from the actual footprint with
    # headroom; >= 32 MiB (helps v5e's 16 MiB scoped default), <= 48 MiB
    # (leaves pipelining headroom inside v7x's 64 MiB physical VMEM).
    vmem_limit = int(min(48 * 1024 * 1024,
                         max(32 * 1024 * 1024,
                             _vmem_bytes(tn, Mp) + 8 * 1024 * 1024)))

    def to_tiles(v):
        f = v.reshape(-1).astype(view_dtype)
        if pad_elems:
            f = jnp.pad(f, (0, pad_elems))   # zero tail: softmax of zeros, sliced off below
        return f.reshape(Np, Mp)

    # K strided window views, each flattened to the lane-dense (Np, Mp) slab,
    # passed as K separate kernel inputs (no stacked patches array).
    tiles = []
    for di in range(kh):
        for dj in range(kw):
            v = x[:, :, di:di + H_out * sh:sh, dj:dj + W_out * sw:sw]
            tiles.append(to_tiles(v))

    in_specs = [pl.BlockSpec((tn, Mp), lambda i: (i, 0)) for _ in range(K)]
    out_spec = pl.BlockSpec((tn, Mp), lambda i: (i, 0))

    out = pl.pallas_call(
        _softpool_kernel,
        out_shape=jax.ShapeDtypeStruct((Np, Mp), out_dtype),
        grid_spec=pltpu.PrefetchScalarGridSpec(
            num_scalar_prefetch=0,
            grid=grid,
            in_specs=in_specs,
            out_specs=out_spec,
        ),
        compiler_params=pltpu.CompilerParams(
            # TODO(synk): try pltpu.CORE_PARALLEL here on v7x to guarantee the
            # 1-D grid is split across both TensorCores.
            dimension_semantics=("parallel",),
            vmem_limit_bytes=vmem_limit,
        ),
    )(*tiles)

    return out.reshape(-1)[:P].reshape(B, C, H_out, W_out)


class SoftPool2d:
    """Pallas-backed SoftPool2d (parameter-free pooling layer)."""

    def __init__(self, kernel_size=2, stride=None, padding=0, stream_bf16=False):
        self.kernel_size = _pair(kernel_size)
        self.stride = _pair(kernel_size if stride is None else stride)
        self.padding = padding
        self.stream_bf16 = stream_bf16

    def __call__(self, x):
        return soft_pool2d(x, kernel_size=self.kernel_size,
                           stride=self.stride, padding=self.padding,
                           stream_bf16=self.stream_bf16)


def _reference_softpool(x, kernel_size=2, stride=None, padding=0):
    # Pure-JAX reference for verification.
    kh, kw = _pair(kernel_size)
    if stride is None:
        stride = kernel_size
    sh, sw = _pair(stride)
    ph, pw = _pair(padding)
    B, C, H, W = x.shape
    H_out = (H + 2 * ph - kh) // sh + 1
    W_out = (W + 2 * pw - kw) // sw + 1
    if ph or pw:
        x = jnp.pad(x, ((0, 0), (0, 0), (ph, ph), (pw, pw)))
    views = []
    for di in range(kh):
        for dj in range(kw):
            views.append(x[:, :, di:di + H_out * sh:sh, dj:dj + W_out * sw:sw])
    p = jnp.stack(views, axis=0).astype(jnp.float32)      # (K, B, C, Ho, Wo)
    w = jax.nn.softmax(p, axis=0)
    return jnp.sum(p * w, axis=0).astype(x.dtype)


if __name__ == "__main__":
    key = jax.random.PRNGKey(0)
    B, C, H, W = 2, 4, 16, 16
    x = jax.random.normal(key, (B, C, H, W), dtype=jnp.float32)

    pool = SoftPool2d(kernel_size=2)          # stride defaults to kernel_size
    y = jax.block_until_ready(pool(x))
    assert y.shape == (B, C, H // 2, W // 2), y.shape
    y_ref = _reference_softpool(x, kernel_size=2)
    assert jnp.allclose(y, y_ref, atol=1e-2, rtol=1e-2), (
        float(jnp.max(jnp.abs(y - y_ref))))

    # Second config: non-default kernel/stride + zero padding (K = 9).
    x2 = jax.random.normal(jax.random.PRNGKey(1), (2, 4, 15, 15), dtype=jnp.float32)
    y2 = jax.block_until_ready(soft_pool2d(x2, kernel_size=3, stride=2, padding=1))
    y2_ref = _reference_softpool(x2, kernel_size=3, stride=2, padding=1)
    assert y2.shape == y2_ref.shape, (y2.shape, y2_ref.shape)
    assert jnp.allclose(y2, y2_ref, atol=1e-2, rtol=1e-2), (
        float(jnp.max(jnp.abs(y2 - y2_ref))))

    # bf16-streaming option (accuracy-gated fast path).
    y3 = jax.block_until_ready(soft_pool2d(x, kernel_size=2, stream_bf16=True))
    assert jnp.allclose(y3, y_ref, atol=5e-2, rtol=5e-2), (
        float(jnp.max(jnp.abs(y3 - y_ref))))

    print("KERNEL_OK")
</pallas_src>

<mosaic_0001>
module attributes {stable_mosaic.version = 11 : i64} {
  func.func @_softpool_kernel(%arg0: i32, %arg1: memref<8x512xf32, #tpu.memory_space<vmem>>, %arg2: memref<8x512xf32, #tpu.memory_space<vmem>>, %arg3: memref<8x512xf32, #tpu.memory_space<vmem>>, %arg4: memref<8x512xf32, #tpu.memory_space<vmem>>, %arg5: memref<8x512xf32, #tpu.memory_space<vmem>>) attributes {dimension_semantics = [#tpu.dimension_semantics<parallel>], iteration_bounds = array<i64: 1>, scalar_prefetch = 0 : i64, scratch_operands = 0 : i64, tpu.core_type = #tpu.core_type<tc>, window_params = [{transform_indices = @transform_0, window_bounds = array<i64: 8, 512>}, {transform_indices = @transform_1, window_bounds = array<i64: 8, 512>}, {transform_indices = @transform_2, window_bounds = array<i64: 8, 512>}, {transform_indices = @transform_3, window_bounds = array<i64: 8, 512>}, {transform_indices = @transform_4, window_bounds = array<i64: 8, 512>}]} {
    %c0 = arith.constant 0 : index
    %c0_0 = arith.constant 0 : index
    %0 = vector.load %arg1[%c0, %c0_0] : memref<8x512xf32, #tpu.memory_space<vmem>>, vector<8x512xf32>
    %c0_1 = arith.constant 0 : index
    %c0_2 = arith.constant 0 : index
    %1 = vector.load %arg2[%c0_1, %c0_2] : memref<8x512xf32, #tpu.memory_space<vmem>>, vector<8x512xf32>
    %2 = arith.maximumf %0, %1 : vector<8x512xf32>
    %c0_3 = arith.constant 0 : index
    %c0_4 = arith.constant 0 : index
    %3 = vector.load %arg3[%c0_3, %c0_4] : memref<8x512xf32, #tpu.memory_space<vmem>>, vector<8x512xf32>
    %4 = arith.maximumf %2, %3 : vector<8x512xf32>
    %c0_5 = arith.constant 0 : index
    %c0_6 = arith.constant 0 : index
    %5 = vector.load %arg4[%c0_5, %c0_6] : memref<8x512xf32, #tpu.memory_space<vmem>>, vector<8x512xf32>
    %6 = arith.maximumf %4, %5 : vector<8x512xf32>
    %cst = arith.constant 0.000000e+00 : f32
    %7 = vector.broadcast %cst : f32 to vector<8x512xf32>
    %cst_7 = arith.constant 0.000000e+00 : f32
    %8 = vector.broadcast %cst_7 : f32 to vector<8x512xf32>
    %c0_8 = arith.constant 0 : index
    %c0_9 = arith.constant 0 : index
    %9 = vector.load %arg1[%c0_8, %c0_9] : memref<8x512xf32, #tpu.memory_space<vmem>>, vector<8x512xf32>
    %10 = arith.subf %9, %6 : vector<8x512xf32>
    %11 = math.exp %10 : vector<8x512xf32>
    %12 = arith.addf %7, %11 : vector<8x512xf32>
    %13 = arith.mulf %11, %9 : vector<8x512xf32>
    %14 = arith.addf %8, %13 : vector<8x512xf32>
    %c0_10 = arith.constant 0 : index
    %c0_11 = arith.constant 0 : index
    %15 = vector.load %arg2[%c0_10, %c0_11] : memref<8x512xf32, #tpu.memory_space<vmem>>, vector<8x512xf32>
    %16 = arith.subf %15, %6 : vector<8x512xf32>
    %17 = math.exp %16 : vector<8x512xf32>
    %18 = arith.addf %12, %17 : vector<8x512xf32>
    %19 = arith.mulf %17, %15 : vector<8x512xf32>
    %20 = arith.addf %14, %19 : vector<8x512xf32>
    %c0_12 = arith.constant 0 : index
    %c0_13 = arith.constant 0 : index
    %21 = vector.load %arg3[%c0_12, %c0_13] : memref<8x512xf32, #tpu.memory_space<vmem>>, vector<8x512xf32>
    %22 = arith.subf %21, %6 : vector<8x512xf32>
    %23 = math.exp %22 : vector<8x512xf32>
    %24 = arith.addf %18, %23 : vector<8x512xf32>
    %25 = arith.mulf %23, %21 : vector<8x512xf32>
    %26 = arith.addf %20, %25 : vector<8x512xf32>
    %c0_14 = arith.constant 0 : index
    %c0_15 = arith.constant 0 : index
    %27 = vector.load %arg4[%c0_14, %c0_15] : memref<8x512xf32, #tpu.memory_space<vmem>>, vector<8x512xf32>
    %28 = arith.subf %27, %6 : vector<8x512xf32>
    %29 = math.exp %28 : vector<8x512xf32>
    %30 = arith.addf %24, %29 : vector<8x512xf32>
    %31 = arith.mulf %29, %27 : vector<8x512xf32>
    %32 = arith.addf %26, %31 : vector<8x512xf32>
    %33 = tpu.reciprocal %30 {approx = true} : vector<8x512xf32> -> vector<8x512xf32>
    %34 = arith.mulf %30, %33 : vector<8x512xf32>
    %cst_16 = arith.constant 2.000000e+00 : f32
    %35 = vector.broadcast %cst_16 : f32 to vector<8x512xf32>
    %36 = arith.subf %35, %34 : vector<8x512xf32>
    %37 = arith.mulf %33, %36 : vector<8x512xf32>
    %38 = arith.mulf %32, %37 : vector<8x512xf32>
    %c0_17 = arith.constant 0 : index
    %c0_18 = arith.constant 0 : index
    %39 = vector.load %arg5[%c0_17, %c0_18] : memref<8x512xf32, #tpu.memory_space<vmem>>, vector<8x512xf32>
    tpu.vector_store %arg5[%c0_17, %c0_18], %38 {strides = array<i32>} : memref<8x512xf32, #tpu.memory_space<vmem>>, vector<8x512xf32>,
    return
  }
  func.func @transform_0(%arg0: i32) -> (i32, i32) {
    %c0_i32 = arith.constant 0 : i32
    %c0_i32_0 = arith.constant 0 : i32
    return %arg0, %c0_i32 : i32, i32
  }
  func.func @transform_1(%arg0: i32) -> (i32, i32) {
    %c0_i32 = arith.constant 0 : i32
    %c0_i32_0 = arith.constant 0 : i32
    return %arg0, %c0_i32 : i32, i32
  }
  func.func @transform_2(%arg0: i32) -> (i32, i32) {
    %c0_i32 = arith.constant 0 : i32
    %c0_i32_0 = arith.constant 0 : i32
    return %arg0, %c0_i32 : i32, i32
  }
  func.func @transform_3(%arg0: i32) -> (i32, i32) {
    %c0_i32 = arith.constant 0 : i32
    %c0_i32_0 = arith.constant 0 : i32
    return %arg0, %c0_i32 : i32, i32
  }
  func.func @transform_4(%arg0: i32) -> (i32, i32) {
    %c0_i32 = arith.constant 0 : i32
    %c0_i32_0 = arith.constant 0 : i32
    return %arg0, %c0_i32 : i32, i32
  }
}

</mosaic_0001>

<bundles_post_ra>
// kernel: tpu_custom_call.1
= control target key start
LH: loop header
LB: loop body
LE: loop exit
PB: predicated region body
PF: predicated region fallthrough
CT: control target
= control target key end

     0   :  { %9 = vsyncpa [#allocation3], 0  ;;  %s563_s0 = inlined_call_operand.hbm [shape: f32[8,512], index: 0, kind: input, shape index: {}]   ;;  %s564_s1 = inlined_call_operand.hbm [shape: f32[8,512], index: 1, kind: input, shape index: {}]   ;;  %s565_s2 = inlined_call_operand.hbm [shape: f32[8,512], index: 2, kind: input, shape index: {}]   ;;  %s566_s3 = inlined_call_operand.hbm [shape: f32[8,512], index: 3, kind: input, shape index: {}]   ;;  %s567_s4 = inlined_call_operand.hbm [shape: f32[8,512], index: 4, kind: output, shape index: {}]  }
   0x1   :  { %10 = vsyncpa [#allocation6], 0 }
   0x2   :  { %11 = vsyncpa [#allocation9], 0 }
   0x3   :  { %12 = vsyncpa [#allocation4], 0  ;;  %s393_s15 = smov [#allocation5]   ;;  %s394_s17 = smov [#allocation2]  }
   0x4   :  { %s29_s16 = sshll.u32 %s393_s15, 4  ;;  %s19_s18 = sshll.u32 %s394_s17, 4  ;;  %s30_s16 = int_to_ptr.vmem [resolvable:$true] %s29_s16  ;;  %s20_s18 = int_to_ptr.vmem [resolvable:$true] %s19_s18 }
   0x5   :  { %s275_s21 = scalar_lea.hbm %s564_s1, 512 }
   0x6   :  { %p276_p0 = scmp.ne.s32.totalorder %s564_s1, %s275_s21  ;;  %p279_p1 = scmp.lt.u32.totalorder %s275_s21, %s564_s1 }
   0x8   :  { %p281_p2 = pnand %p279_p1, %p276_p0 }
   0xa   :  { %284 = shalt.err (!%p281_p2)
}
   0xb   :  { %s285_s26 = scalar_lea.vmem %s30_s16, 512  ;;  %p290_p4 = scmp.lt.s32.totalorder %s30_s16, %s30_s16 }
   0xc   :  { %p286_p3 = scmp.ne.s32.totalorder %s30_s16, %s285_s26  ;;  %p291_p5 = scmp.lt.s32.totalorder %s285_s26, %s285_s26 }
   0xe   :  { %p292_p6 = por %p291_p5, %p290_p4 }
  0x10   :  { %p293_p7 = pnand %p292_p6, %p286_p3 }
  0x12   :  { %296 = shalt.err (!%p293_p7)
}
  0x13   :  { %32 = dma.hbm_to_vmem [thread:$0]  %s564_s1, 512, %s30_s16, [#allocation6]  }
  0x14   :  { %s297_s5 = scalar_lea.hbm %s563_s0, 512 }
  0x15   :  { %p298_p8 = scmp.ne.s32.totalorder %s563_s0, %s297_s5  ;;  %p301_p9 = scmp.lt.u32.totalorder %s297_s5, %s563_s0 }
  0x17   :  { %p303_p10 = pnand %p301_p9, %p298_p8 }
  0x19   :  { %306 = shalt.err (!%p303_p10)
}
  0x1a   :  { %s307_s10 = scalar_lea.vmem %s20_s18, 512  ;;  %p312_p12 = scmp.lt.s32.totalorder %s20_s18, %s20_s18 }
  0x1b   :  { %p308_p11 = scmp.ne.s32.totalorder %s20_s18, %s307_s10  ;;  %p313_p13 = scmp.lt.s32.totalorder %s307_s10, %s307_s10 }
  0x1d   :  { %p314_p0 = por %p313_p13, %p312_p12 }
  0x1f   :  { %p315_p1 = pnand %p314_p0, %p308_p11 }
  0x21   :  { %318 = shalt.err (!%p315_p1)
}
  0x22   :  { %22 = dma.hbm_to_vmem [thread:$0]  %s563_s0, 512, %s20_s18, [#allocation3]  }
  0x23   :  { %s395_s12 = smov [#allocation7]   ;;  %s396_s14 = smov [#allocation8]  }
  0x24   :  { %s39_s13 = sshll.u32 %s395_s12, 4  ;;  %s49_s15 = sshll.u32 %s396_s14, 4  ;;  %s40_s13 = int_to_ptr.vmem [resolvable:$true] %s39_s13  ;;  %s50_s15 = int_to_ptr.vmem [resolvable:$true] %s49_s15 }
  0x25   :  { %s319_s19 = scalar_lea.hbm %s565_s2, 512 }
  0x26   :  { %p320_p2 = scmp.ne.s32.totalorder %s565_s2, %s319_s19  ;;  %p323_p3 = scmp.lt.u32.totalorder %s319_s19, %s565_s2 }
  0x28   :  { %p325_p4 = pnand %p323_p3, %p320_p2 }
  0x2a   :  { %328 = shalt.err (!%p325_p4)
}
  0x2b   :  { %s329_s0 = scalar_lea.vmem %s40_s13, 512  ;;  %p334_p6 = scmp.lt.s32.totalorder %s40_s13, %s40_s13 }
  0x2c   :  { %p330_p5 = scmp.ne.s32.totalorder %s40_s13, %s329_s0  ;;  %p335_p7 = scmp.lt.s32.totalorder %s329_s0, %s329_s0 }
  0x2e   :  { %p336_p8 = por %p335_p7, %p334_p6 }
  0x30   :  { %p337_p9 = pnand %p336_p8, %p330_p5 }
  0x32   :  { %340 = shalt.err (!%p337_p9)
}
  0x33   :  { %42 = dma.hbm_to_vmem [thread:$0]  %s565_s2, 512, %s40_s13, [#allocation6]  }
  0x34   :  { %s341_s27 = scalar_lea.hbm %s566_s3, 512 }
  0x35   :  { %p342_p10 = scmp.ne.s32.totalorder %s566_s3, %s341_s27  ;;  %p345_p11 = scmp.lt.u32.totalorder %s341_s27, %s566_s3 }
  0x37   :  { %p347_p12 = pnand %p345_p11, %p342_p10 }
  0x39   :  { %350 = shalt.err (!%p347_p12)
}
  0x3a   :  { %s351_s6 = scalar_lea.vmem %s50_s15, 512  ;;  %p356_p0 = scmp.lt.s32.totalorder %s50_s15, %s50_s15 }
  0x3b   :  { %p352_p13 = scmp.ne.s32.totalorder %s50_s15, %s351_s6  ;;  %p357_p1 = scmp.lt.s32.totalorder %s351_s6, %s351_s6 }
  0x3d   :  { %p358_p2 = por %p357_p1, %p356_p0 }
  0x3f   :  { %p359_p3 = pnand %p358_p2, %p352_p13 }
  0x41   :  { %362 = shalt.err (!%p359_p3)
}
  0x42   :  { %52 = dma.hbm_to_vmem [thread:$0]  %s566_s3, 512, %s50_s15, [#allocation9]  }
  0x43   :  { %385 = dma.done.wait [#allocation3], 512  }
  0x44   :  { %386 = vsyncadd [#allocation3], 4294966784 }
  0x45   :  { %387 = dma.done.wait [#allocation6], 1024  }
  0x46   :  { %388 = vsyncadd [#allocation6], 4294966272 }
  0x47   :  { %389 = dma.done.wait [#allocation9], 512  }
  0x48   :  { %390 = vsyncadd [#allocation9], 4294966784  ;;  %v471_v0 = vld [vmem:[#allocation2] sm:$0xff]  ;;  %v479_v4 = vld [vmem:[#allocation2 + $0x8] sm:$0xff]  ;;  %s397_s3 = smov [#allocation10]  }
  0x49   :  { %v473_v1 = vld [vmem:[#allocation5] sm:$0xff]  ;;  %v481_v5 = vld [vmem:[#allocation5 + $0x8] sm:$0xff]  ;;  %v489_v9 = vld [vmem:[#allocation2 + $0x10] sm:$0xff]  ;;  %s219_s8 = sshll.u32 %s397_s3, 4  ;;  %s220_s8 = int_to_ptr.vmem [resolvable:$true] %s219_s8 }
  0x4a   :  { %v475_v2 = vld [vmem:[#allocation7] sm:$0xff]  ;;  %v73_v3 = vmax.f32 %v471_v0, %v473_v1  ;;  %v74_v7 = vmax.f32 %v479_v4, %v481_v5  ;;  %v487_v8 = vld [vmem:[#allocation7 + $0x8] sm:$0xff]  ;;  %v494_v12 = vld [vmem:[#allocation5 + $0x10] sm:$0xff]  ;;  %s363_s9 = scalar_lea.vmem %s220_s8, 512  ;;  %p368_p5 = scmp.lt.s32.totalorder %s220_s8, %s220_s8 }
  0x4b   :  { %v483_v6 = vld [vmem:[#allocation8] sm:$0xff]  ;;  %v492_v11 = vld [vmem:[#allocation8 + $0x8] sm:$0xff]  ;;  %v496_v13 = vld [vmem:[#allocation7 + $0x10] sm:$0xff]  ;;  %v75_v15 = vmax.f32 %v489_v9, %v494_v12  ;;  %p364_p4 = scmp.ne.s32.totalorder %s220_s8, %s363_s9  ;;  %p369_p6 = scmp.lt.s32.totalorder %s363_s9, %s363_s9 }
  0x4c   :  { %v81_v10 = vmax.f32 %v73_v3, %v475_v2  ;;  %v82_v14 = vmax.f32 %v74_v7, %v487_v8  ;;  %v501_v16 = vld [vmem:[#allocation2 + $0x18] sm:$0xff]  ;;  %v508_v21 = vld [vmem:[#allocation8 + $0x10] sm:$0xff] }
  0x4d   :  { %v503_v17 = vld [vmem:[#allocation5 + $0x18] sm:$0xff]  ;;  %v83_v20 = vmax.f32 %v75_v15, %v496_v13  ;;  %p370_p7 = por %p369_p6, %p368_p5 }
  0x4e   :  { %v89_v18 = vmax.f32 %v81_v10, %v483_v6  ;;  %v90_v19 = vmax.f32 %v82_v14, %v492_v11  ;;  %v76_v22 = vmax.f32 %v501_v16, %v503_v17  ;;  %v516_v27 = vld [vmem:[#allocation7 + $0x18] sm:$0xff] }
  0x4f   :  { %v91_v34 = vmax.f32 %v83_v20, %v508_v21  ;;  %v524_v38 = vld [vmem:[#allocation8 + $0x18] sm:$0xff]  ;;  %p371_p8 = pnand %p370_p7, %p364_p4 }
  0x50   :  { %v93_v23 = vsub.f32 %v471_v0, %v89_v18  ;;  %v117_v24 = vsub.f32 %v473_v1, %v89_v18  ;;  %v141_v25 = vsub.f32 %v475_v2, %v89_v18  ;;  %v165_v26 = vsub.f32 %v483_v6, %v89_v18 }
  0x51   :  { %v94_v28 = vsub.f32 %v479_v4, %v90_v19  ;;  %v118_v29 = vsub.f32 %v481_v5, %v90_v19  ;;  %v142_v30 = vsub.f32 %v487_v8, %v90_v19  ;;  %v166_v36 = vsub.f32 %v492_v11, %v90_v19 }
  0x52   :  { %v97_v31 = vmul.f32 1.442695, %v93_v23  ;;  %v121_v32 = vmul.f32 1.442695, %v117_v24  ;;  %v145_v33 = vmul.f32 1.442695, %v141_v25  ;;  %v84_v37 = vmax.f32 %v76_v22, %v516_v27 }
  0x53   :  { %v169_v35 = vmul.f32 1.442695, %v165_v26  ;;  %v99_v39 = vmul.f32 1.442695, %v94_v28  ;;  %v95_v40 = vsub.f32 %v489_v9, %v91_v34  ;;  %v123_v41 = vmul.f32 1.442695, %v118_v29 }
  0x54   :  { %235 = vpow2.f32 %v97_v31  ;;  %v119_v42 = vsub.f32 %v494_v12, %v91_v34  ;;  %v147_v43 = vmul.f32 1.442695, %v142_v30  ;;  %v143_v44 = vsub.f32 %v496_v13, %v91_v34 }
  0x55   :  { %237 = vpow2.f32 %v121_v32  ;;  %v92_v45 = vmax.f32 %v84_v37, %v524_v38  ;;  %v171_v46 = vmul.f32 1.442695, %v166_v36  ;;  %v167_v47 = vsub.f32 %v508_v21, %v91_v34 }
  0x56   :  { %239 = vpow2.f32 %v145_v33  ;;  %v101_v48 = vmul.f32 1.442695, %v95_v40  ;;  %v125_v50 = vmul.f32 1.442695, %v119_v42  ;;  %v149_v52 = vmul.f32 1.442695, %v143_v44 }
  0x57   :  { %241 = vpow2.f32 %v169_v35  ;;  %v96_v49 = vsub.f32 %v501_v16, %v92_v45  ;;  %v120_v51 = vsub.f32 %v503_v17, %v92_v45  ;;  %v144_v53 = vsub.f32 %v516_v27, %v92_v45 }
  0x58   :  { %243 = vpow2.f32 %v99_v39  ;;  %v173_v54 = vmul.f32 1.442695, %v167_v47  ;;  %v168_v55 = vsub.f32 %v524_v38, %v92_v45 }
  0x59   :  { %245 = vpow2.f32 %v123_v41  ;;  %v103_v56 = vmul.f32 1.442695, %v96_v49  ;;  %v127_v57 = vmul.f32 1.442695, %v120_v51  ;;  %v151_v59 = vmul.f32 1.442695, %v144_v53 }
  0x5a   :  { %247 = vpow2.f32 %v147_v43  ;;  %v175_v61 = vmul.f32 1.442695, %v168_v55 }
  0x5b   :  { %249 = vpow2.f32 %v171_v46 }
  0x5c   :  { %251 = vpow2.f32 %v101_v48 }
  0x5d   :  { %253 = vpow2.f32 %v125_v50 }
  0x5e   :  { %v236_v58 = vpop.eup %235  ;;  %255 = vpow2.f32 %v149_v52 }
  0x5f   :  { %v238_v60 = vpop.eup %237  ;;  %257 = vpow2.f32 %v173_v54  ;;  %v109_v25 = vmul.f32 %v236_v58, %v471_v0 }
  0x60   :  { %v240_v62 = vpop.eup %239  ;;  %v129_v63 = vadd.f32 %v238_v60, %v236_v58  ;;  %259 = vpow2.f32 %v103_v56  ;;  %v133_v26 = vmul.f32 %v238_v60, %v473_v1 }
  0x61   :  { %v242_v3 = vpop.eup %241  ;;  %261 = vpow2.f32 %v127_v57  ;;  %v157_v39 = vmul.f32 %v240_v62, %v475_v2 }
  0x62   :  { %v244_v7 = vpop.eup %243  ;;  %v153_v10 = vadd.f32 %v240_v62, %v129_v63  ;;  %263 = vpow2.f32 %v151_v59  ;;  %v137_v37 = vadd.f32 %v133_v26, %v109_v25  ;;  %v181_v46 = vmul.f32 %v242_v3, %v483_v6 }
  0x63   :  { %v246_v14 = vpop.eup %245  ;;  %265 = vpow2.f32 %v175_v61  ;;  %v110_v32 = vmul.f32 %v244_v7, %v479_v4 }
  0x64   :  { %v248_v15 = vpop.eup %247  ;;  %v177_v18 = vadd.f32 %v242_v3, %v153_v10  ;;  %v130_v19 = vadd.f32 %v246_v14, %v244_v7  ;;  %v134_v33 = vmul.f32 %v246_v14, %v481_v5  ;;  %v161_v45 = vadd.f32 %v157_v39, %v137_v37 }
  0x65   :  { %v250_v20 = vpop.eup %249  ;;  %v158_v43 = vmul.f32 %v248_v15, %v487_v8 }
  0x66   :  { %v252_v22 = vpop.eup %251  ;;  %267 = vrcp.f32 %v177_v18  ;;  %v154_v23 = vadd.f32 %v248_v15, %v130_v19  ;;  %v138_v1 = vadd.f32 %v134_v33, %v110_v32  ;;  %v182_v2 = vmul.f32 %v250_v20, %v492_v11 }
  0x67   :  { %v254_v24 = vpop.eup %253  ;;  %v111_v44 = vmul.f32 %v252_v22, %v489_v9  ;;  %v185_v8 = vadd.f32 %v181_v46, %v161_v45 }
  0x68   :  { %v256_v28 = vpop.eup %255  ;;  %v178_v29 = vadd.f32 %v250_v20, %v154_v23  ;;  %v131_v30 = vadd.f32 %v254_v24, %v252_v22  ;;  %v135_v4 = vmul.f32 %v254_v24, %v494_v12  ;;  %v162_v50 = vadd.f32 %v158_v43, %v138_v1 }
  0x69   :  { %v258_v31 = vpop.eup %257  ;;  %v159_v52 = vmul.f32 %v256_v28, %v496_v13 }
  0x6a   :  { %v260_v34 = vpop.eup %259  ;;  %269 = vrcp.f32 %v178_v29  ;;  %v155_v35 = vadd.f32 %v256_v28, %v131_v30  ;;  %v139_v51 = vadd.f32 %v135_v4, %v111_v44  ;;  %v186_v6 = vadd.f32 %v182_v2, %v162_v50 }
  0x6b   :  { %v262_v36 = vpop.eup %261  ;;  %v112_v9 = vmul.f32 %v260_v34, %v501_v16  ;;  %v183_v58 = vmul.f32 %v258_v31, %v508_v21 }
  0x6c   :  { %v264_v40 = vpop.eup %263  ;;  %v179_v41 = vadd.f32 %v258_v31, %v155_v35  ;;  %v132_v0 = vadd.f32 %v262_v36, %v260_v34  ;;  %v136_v12 = vmul.f32 %v262_v36, %v503_v17  ;;  %v163_v57 = vadd.f32 %v159_v52, %v139_v51 }
  0x6d   :  { %v266_v42 = vpop.eup %265  ;;  %v160_v61 = vmul.f32 %v264_v40, %v516_v27 }
  0x6e   :  { %271 = vrcp.f32 %v179_v41  ;;  %v156_v5 = vadd.f32 %v264_v40, %v132_v0  ;;  %v140_v60 = vadd.f32 %v136_v12, %v112_v9  ;;  %v187_v3 = vadd.f32 %v183_v58, %v163_v57 }
  0x6f   :  { %v184_v10 = vmul.f32 %v266_v42, %v524_v38 }
  0x70   :  { %v268_v47 = vpop.eup %267  ;;  %v180_v48 = vadd.f32 %v266_v42, %v156_v5  ;;  %v164_v17 = vadd.f32 %v160_v61, %v140_v60 }
  0x71   :  { %v193_v49 = vmul.f32 %v268_v47, %v177_v18 }
  0x72   :  { %273 = vrcp.f32 %v180_v48  ;;  %v188_v19 = vadd.f32 %v184_v10, %v164_v17 }
  0x73   :  { %v197_v53 = vsub.f32 2.0, %v193_v49 }
  0x74   :  { %v270_v54 = vpop.eup %269 }
  0x75   :  { %v201_v55 = vmul.f32 %v268_v47, %v197_v53  ;;  %v194_v56 = vmul.f32 %v270_v54, %v178_v29 }
  0x77   :  { %v205_v59 = vmul.f32 %v201_v55, %v185_v8  ;;  %v198_v11 = vsub.f32 2.0, %v194_v56 }
  0x78   :  { %v272_v13 = vpop.eup %271 }
  0x79   :  { %209 = vst [vmem:[#allocation10] sm:$0xff] %v205_v59  ;;  %v202_v62 = vmul.f32 %v270_v54, %v198_v11  ;;  %v195_v63 = vmul.f32 %v272_v13, %v179_v41 }
  0x7b   :  { %v206_v16 = vmul.f32 %v202_v62, %v186_v6  ;;  %v199_v7 = vsub.f32 2.0, %v195_v63 }
  0x7c   :  { %v274_v14 = vpop.eup %273 }
  0x7d   :  { %210 = vst [vmem:[#allocation10 + $0x8] sm:$0xff] %v206_v16  ;;  %v203_v15 = vmul.f32 %v272_v13, %v199_v7  ;;  %v196_v18 = vmul.f32 %v274_v14, %v180_v48 }
  0x7f   :  { %v207_v21 = vmul.f32 %v203_v15, %v187_v3  ;;  %v200_v20 = vsub.f32 2.0, %v196_v18 }
  0x81   :  { %211 = vst [vmem:[#allocation10 + $0x10] sm:$0xff] %v207_v21  ;;  %v204_v27 = vmul.f32 %v274_v14, %v200_v20 }
  0x83   :  { %v208_v22 = vmul.f32 %v204_v27, %v188_v19 }
  0x85   :  { %212 = vst [vmem:[#allocation10 + $0x18] sm:$0xff] %v208_v22 }
  0x86   :  { %374 = shalt.err (!%p371_p8)
}
  0x87   :  { %s375_s11 = scalar_lea.hbm %s567_s4, 512 }
  0x88   :  { %p376_p9 = scmp.ne.s32.totalorder %s567_s4, %s375_s11  ;;  %p379_p10 = scmp.lt.u32.totalorder %s375_s11, %s567_s4 }
  0x8a   :  { %p381_p11 = pnand %p379_p10, %p376_p9 }
  0x8c   :  { %384 = shalt.err (!%p381_p11)
}
  0x8d   :  { %222 = dma.vmem_to_hbm [thread:$0]  %s220_s8, 512, %s567_s4, [#allocation4]  }
  0x8e   :  { %391 = dma.done.wait [#allocation4], 512  }
  0x8f   :  { %392 = vsyncadd [#allocation4], 4294966784 }
  0x90   :  { %226 = vsyncpa [#allocation3], 1 }
  0x91   :  { %227 = vsyncpa [#allocation6], 1 }
  0x92   :  { %228 = vsyncpa [#allocation9], 1 }
  0x93   :  { %229 = vsyncpa [#allocation4], 1 }

</bundles_post_ra>
